<compile_context>
chip_gen: v7x
topology: tpu7x:2x2x1
jax: 0.10.0
libtpu: 0.0.40
codegen_flags: <defaults>
</compile_context>

<pallas_src>
import functools

import jax
import jax.numpy as jnp
from jax.experimental import pallas as pl
from jax.experimental.pallas import tpu as pltpu


def _round_up(v, m):
    return (v + m - 1) // m * m


def _cdiv(a, b):
    return (a + b - 1) // b


def _apply_epilogue(acc, inv_xn_ref, labels_ref, aux_ref, s):
    """Deferred-normalization + margin epilogue on an f32 accumulator tile."""
    inv_wn = aux_ref[0:1, :]          # 1 / ||w_col||
    cos_m = aux_ref[1:2, :]
    sin_m = aux_ref[2:3, :]
    col = aux_ref[3:4, :]             # global column index (as f32)

    logits = acc * inv_xn_ref[...] * inv_wn            # cosine similarities
    c = jnp.clip(logits, -1.0 + 1e-07, 1.0 - 1e-07)
    # cos(acos(c) + m) = c*cos(m) - sqrt(1-c^2)*sin(m)   (sin(theta) >= 0)
    sin_theta = jnp.sqrt(jnp.maximum(1.0 - c * c, 0.0))
    target = c * cos_m - sin_theta * sin_m
    one_hot = col == labels_ref[...]                   # (1,tc) vs (tb,1) -> (tb,tc)
    return jnp.where(one_hot, target, logits) * jnp.float32(s)


def _camri_kernel(x_ref, inv_xn_ref, labels_ref, w_ref, aux_ref, out_ref, *,
                  s, nk):
    if nk == 1:
        # No K loop: single matmul + epilogue, no init/finalize branches.
        acc = jnp.dot(x_ref[...], w_ref[...], preferred_element_type=jnp.float32)
        out_ref[...] = _apply_epilogue(acc, inv_xn_ref, labels_ref, aux_ref, s)
    else:
        k = pl.program_id(2)          # top level only (never inside pl.when)

        @pl.when(k == 0)
        def _init():
            out_ref[...] = jnp.zeros_like(out_ref)

        out_ref[...] += jnp.dot(x_ref[...], w_ref[...],
                                preferred_element_type=jnp.float32)

        @pl.when(k == nk - 1)
        def _finalize():
            out_ref[...] = _apply_epilogue(out_ref[...], inv_xn_ref,
                                           labels_ref, aux_ref, s)


def camri_loss_forward(x, weight, m, labels, s, *, tb=None, tc=None, tk=None):
    """Pallas-accelerated CAMRI_Loss.forward (training mode).

    x: (B, D) f32, weight: (D, C) f32, m: (C,) f32 margins, labels: (B,) int,
    s: python float scale.  Returns (B, C) f32 margin-adjusted scaled logits.
    """
    B, D = x.shape
    C = weight.shape[1]

    # ---- tile selection ----------------------------------------------------
    if tb is None:
        tb = min(_round_up(B, 8), 256)
    if tc is None:
        c128 = _round_up(C, 128)
        tc = c128 if c128 <= 512 else 256        # fill the 256-wide MXU (v6e/v7x)
    if tk is None:
        d128 = _round_up(D, 128)
        if d128 <= 2048:
            tk = d128                            # collapse the K axis when possible
        else:
            tk = _round_up(_cdiv(d128, _cdiv(d128, 2048)), 128)

    B_pad, C_pad, D_pad = _round_up(B, tb), _round_up(C, tc), _round_up(D, tk)
    nb, nc, nk = B_pad // tb, C_pad // tc, D_pad // tk

    # ---- operand prep (norms hoisted out of the kernel) ----------------------
    xf = x.astype(jnp.float32)
    wf = weight.astype(jnp.float32)
    # 1/max(||.||, 1e-12) == rsqrt(max(||.||^2, 1e-24))   (matches F.normalize)
    inv_xn = jax.lax.rsqrt(jnp.maximum(jnp.sum(xf * xf, axis=1, keepdims=True), 1e-24))
    inv_wn = jax.lax.rsqrt(jnp.maximum(jnp.sum(wf * wf, axis=0, keepdims=True), 1e-24))

    if (B_pad, D_pad) != (B, D):
        xf = jnp.pad(xf, ((0, B_pad - B), (0, D_pad - D)))
    if (D_pad, C_pad) != (D, C):
        wf = jnp.pad(wf, ((0, D_pad - D), (0, C_pad - C)))
    if B_pad != B:
        inv_xn = jnp.pad(inv_xn, ((0, B_pad - B), (0, 0)))
    labels_f = labels.astype(jnp.float32).reshape(B, 1)
    if B_pad != B:
        labels_f = jnp.pad(labels_f, ((0, B_pad - B), (0, 0)), constant_values=-1.0)

    m_row = m.astype(jnp.float32).reshape(1, C)
    if C_pad != C:
        m_row = jnp.pad(m_row, ((0, 0), (0, C_pad - C)))
        inv_wn = jnp.pad(inv_wn, ((0, 0), (0, C_pad - C)))
    col_idx = jnp.arange(C_pad, dtype=jnp.float32).reshape(1, C_pad)
    # Single packed (8, C_pad) aux array -> one DMA per class tile.
    aux = jnp.pad(
        jnp.concatenate([inv_wn, jnp.cos(m_row), jnp.sin(m_row), col_idx], axis=0),
        ((0, 4), (0, 0)))

    # ---- grid ordering: keep the bigger operand resident --------------------
    bytes_batch_outer = B_pad * D_pad + nb * D_pad * C_pad   # x once, W nb times
    bytes_class_outer = nc * B_pad * D_pad + D_pad * C_pad   # W once, x nc times
    if bytes_class_outer < bytes_batch_outer:
        grid = (nc, nb, nk)
        x_map = lambda j, i, k: (i, k)
        row_map = lambda j, i, k: (i, 0)
        w_map = lambda j, i, k: (k, j)
        aux_map = lambda j, i, k: (0, j)
        out_map = lambda j, i, k: (i, j)
    else:
        grid = (nb, nc, nk)
        x_map = lambda i, j, k: (i, k)
        row_map = lambda i, j, k: (i, 0)
        w_map = lambda i, j, k: (k, j)
        aux_map = lambda i, j, k: (0, j)
        out_map = lambda i, j, k: (i, j)

    # ---- VMEM budget: real working set (double-buffered) + headroom ---------
    blk_bytes = 4 * (tb * tk + tk * tc + tb * tc + 2 * tb + 8 * tc)
    vmem_limit = int(min(max(4 * blk_bytes, 16 << 20), 48 << 20))

    kernel = functools.partial(_camri_kernel, s=float(s), nk=nk)

    out_p = pl.pallas_call(
        kernel,
        out_shape=jax.ShapeDtypeStruct((B_pad, C_pad), jnp.float32),
        grid=grid,
        in_specs=[
            pl.BlockSpec((tb, tk), x_map),     # x
            pl.BlockSpec((tb, 1), row_map),    # 1/||x_row||
            pl.BlockSpec((tb, 1), row_map),    # labels (as f32)
            pl.BlockSpec((tk, tc), w_map),     # weight
            pl.BlockSpec((8, tc), aux_map),    # packed [inv_wn; cos m; sin m; col]
        ],
        out_specs=pl.BlockSpec((tb, tc), out_map),
        compiler_params=pltpu.CompilerParams(
            dimension_semantics=("parallel", "parallel", "arbitrary"),
            vmem_limit_bytes=vmem_limit,
        ),
    )(xf, inv_xn, labels_f, wf, aux)

    if (B_pad, C_pad) == (B, C):
        return out_p
    return out_p[:B, :C]


def camri_loss_reference(x, weight, m, labels, s):
    """Pure-JAX reference matching the PyTorch module (training mode)."""
    eps = 1e-12
    x_n = x / jnp.maximum(jnp.linalg.norm(x, axis=1, keepdims=True), eps)
    w_n = weight / jnp.maximum(jnp.linalg.norm(weight, axis=0, keepdims=True), eps)
    logits = x_n @ w_n
    theta = jnp.arccos(jnp.clip(logits, -1.0 + 1e-07, 1.0 - 1e-07))
    target = jnp.cos(theta + m[None, :])
    one_hot = jax.nn.one_hot(labels, weight.shape[1], dtype=logits.dtype)
    out = logits * (1 - one_hot) + target * one_hot
    return out * s


def _make_margin(n_classes, important_classes, ms):
    m = jnp.zeros((n_classes,), jnp.float32)
    for i, mi in zip(important_classes, ms):
        m = m.at[i].set(mi)
    return m


if __name__ == "__main__":
    s = 30.0
    important_classes = [0, 3, 7]
    ms = [0.50, 0.35, 0.20]
    key = jax.random.PRNGKey(0)

    # Case 1: module-native small shapes (single tile after padding).
    n_classes, input_dim, batch = 16, 32, 8
    m1 = _make_margin(n_classes, important_classes, ms)
    k1, k2, k3, key = jax.random.split(key, 4)
    x1 = jax.random.normal(k1, (batch, input_dim), dtype=jnp.float32)
    w1 = jax.random.normal(k2, (input_dim, n_classes), dtype=jnp.float32)
    l1 = jax.random.randint(k3, (batch,), 0, n_classes, dtype=jnp.int32)
    out1 = jax.block_until_ready(camri_loss_forward(x1, w1, m1, l1, s))
    ref1 = camri_loss_reference(x1, w1, m1, l1, s)
    assert out1.shape == (batch, n_classes)
    assert jnp.allclose(out1, ref1, atol=1e-3, rtol=1e-3), "mismatch (case 1)"

    # Case 2: non-aligned shapes, single K tile (typical path, nk==1).
    n_classes2, input_dim2, batch2 = 200, 700, 24
    m2 = _make_margin(n_classes2, important_classes, ms)
    k1, k2, k3, key = jax.random.split(key, 4)
    x2 = jax.random.normal(k1, (batch2, input_dim2), dtype=jnp.float32)
    w2 = jax.random.normal(k2, (input_dim2, n_classes2), dtype=jnp.float32)
    l2 = jax.random.randint(k3, (batch2,), 0, n_classes2, dtype=jnp.int32)
    out2 = jax.block_until_ready(camri_loss_forward(x2, w2, m2, l2, s))
    ref2 = camri_loss_reference(x2, w2, m2, l2, s)
    assert out2.shape == (batch2, n_classes2)
    assert jnp.allclose(out2, ref2, atol=1e-3, rtol=1e-3), "mismatch (case 2)"

    # Case 3: force class tiling (nc>1) and a K reduction (nk>1).
    out3 = jax.block_until_ready(
        camri_loss_forward(x2, w2, m2, l2, s, tc=128, tk=256))
    assert out3.shape == (batch2, n_classes2)
    assert jnp.allclose(out3, ref2, atol=1e-3, rtol=1e-3), "mismatch (case 3)"

    print("KERNEL_OK")
</pallas_src>

<mosaic_0001>
module attributes {stable_mosaic.version = 11 : i64} {
  func.func @_camri_kernel(%arg0: i32, %arg1: i32, %arg2: i32, %arg3: memref<8x128xf32, #tpu.memory_space<vmem>>, %arg4: memref<8x1xf32, #tpu.memory_space<vmem>>, %arg5: memref<8x1xf32, #tpu.memory_space<vmem>>, %arg6: memref<128x128xf32, #tpu.memory_space<vmem>>, %arg7: memref<8x128xf32, #tpu.memory_space<vmem>>, %arg8: memref<8x128xf32, #tpu.memory_space<vmem>>) attributes {dimension_semantics = [#tpu.dimension_semantics<parallel>, #tpu.dimension_semantics<parallel>, #tpu.dimension_semantics<arbitrary>], iteration_bounds = array<i64: 1, 1, 1>, scalar_prefetch = 0 : i64, scratch_operands = 0 : i64, tpu.core_type = #tpu.core_type<tc>, window_params = [{transform_indices = @transform_0, window_bounds = array<i64: 8, 128>}, {transform_indices = @transform_1, window_bounds = array<i64: 8, 1>}, {transform_indices = @transform_2, window_bounds = array<i64: 8, 1>}, {transform_indices = @transform_3, window_bounds = array<i64: 128, 128>}, {transform_indices = @transform_4, window_bounds = array<i64: 8, 128>}, {transform_indices = @transform_5, window_bounds = array<i64: 8, 128>}]} {
    %c0 = arith.constant 0 : index
    %c0_0 = arith.constant 0 : index
    %0 = vector.load %arg3[%c0, %c0_0] : memref<8x128xf32, #tpu.memory_space<vmem>>, vector<8x128xf32>
    %c0_1 = arith.constant 0 : index
    %c0_2 = arith.constant 0 : index
    %1 = vector.load %arg6[%c0_1, %c0_2] : memref<128x128xf32, #tpu.memory_space<vmem>>, vector<128x128xf32>
    %cst = arith.constant dense<0.000000e+00> : vector<8x128xf32>
    %2 = tpu.matmul %0, %1, %cst {dimension_numbers = #tpu.dot_dimension_numbers<[1], [0], [0], [1], [0, 0, 1, 1], [], []>} : vector<8x128xf32>, vector<128x128xf32>, vector<8x128xf32> -> vector<8x128xf32>
    %c0_3 = arith.constant 0 : index
    %c0_4 = arith.constant 0 : index
    %3 = vector.load %arg7[%c0_3, %c0_4] : memref<8x128xf32, #tpu.memory_space<vmem>>, vector<1x128xf32>
    %c1 = arith.constant 1 : index
    %c0_5 = arith.constant 0 : index
    %4 = vector.load %arg7[%c1, %c0_5] : memref<8x128xf32, #tpu.memory_space<vmem>>, vector<1x128xf32>
    %c2 = arith.constant 2 : index
    %c0_6 = arith.constant 0 : index
    %5 = vector.load %arg7[%c2, %c0_6] : memref<8x128xf32, #tpu.memory_space<vmem>>, vector<1x128xf32>
    %c3 = arith.constant 3 : index
    %c0_7 = arith.constant 0 : index
    %6 = vector.load %arg7[%c3, %c0_7] : memref<8x128xf32, #tpu.memory_space<vmem>>, vector<1x128xf32>
    %c0_8 = arith.constant 0 : index
    %c0_9 = arith.constant 0 : index
    %7 = vector.load %arg4[%c0_8, %c0_9] : memref<8x1xf32, #tpu.memory_space<vmem>>, vector<8x1xf32>
    %8 = vector.broadcast %7 : vector<8x1xf32> to vector<8x128xf32>
    %9 = arith.mulf %2, %8 : vector<8x128xf32>
    %10 = vector.broadcast %3 : vector<1x128xf32> to vector<8x128xf32>
    %11 = arith.mulf %9, %10 : vector<8x128xf32>
    %cst_10 = arith.constant -0.99999988 : f32
    %cst_11 = arith.constant 0.99999988 : f32
    %12 = vector.broadcast %cst_10 : f32 to vector<8x128xf32>
    %13 = arith.maximumf %12, %11 : vector<8x128xf32>
    %14 = vector.broadcast %cst_11 : f32 to vector<8x128xf32>
    %15 = arith.minimumf %14, %13 : vector<8x128xf32>
    %16 = arith.mulf %15, %15 : vector<8x128xf32>
    %cst_12 = arith.constant 1.000000e+00 : f32
    %17 = vector.broadcast %cst_12 : f32 to vector<8x128xf32>
    %18 = arith.subf %17, %16 : vector<8x128xf32>
    %cst_13 = arith.constant 0.000000e+00 : f32
    %19 = vector.broadcast %cst_13 : f32 to vector<8x128xf32>
    %20 = arith.maximumf %18, %19 : vector<8x128xf32>
    %21 = math.sqrt %20 : vector<8x128xf32>
    %22 = vector.broadcast %4 : vector<1x128xf32> to vector<8x128xf32>
    %23 = arith.mulf %15, %22 : vector<8x128xf32>
    %24 = vector.broadcast %5 : vector<1x128xf32> to vector<8x128xf32>
    %25 = arith.mulf %21, %24 : vector<8x128xf32>
    %26 = arith.subf %23, %25 : vector<8x128xf32>
    %c0_14 = arith.constant 0 : index
    %c0_15 = arith.constant 0 : index
    %27 = vector.load %arg5[%c0_14, %c0_15] : memref<8x1xf32, #tpu.memory_space<vmem>>, vector<8x1xf32>
    %28 = vector.broadcast %6 : vector<1x128xf32> to vector<8x128xf32>
    %29 = vector.broadcast %27 : vector<8x1xf32> to vector<8x128xf32>
    %30 = arith.cmpf oeq, %28, %29 : vector<8x128xf32>
    %31 = arith.select %30, %26, %11 : vector<8x128xi1>, vector<8x128xf32>
    %cst_16 = arith.constant 3.000000e+01 : f32
    %32 = vector.broadcast %cst_16 : f32 to vector<8x128xf32>
    %33 = arith.mulf %31, %32 : vector<8x128xf32>
    %c0_17 = arith.constant 0 : index
    %c0_18 = arith.constant 0 : index
    %34 = vector.load %arg8[%c0_17, %c0_18] : memref<8x128xf32, #tpu.memory_space<vmem>>, vector<8x128xf32>
    tpu.vector_store %arg8[%c0_17, %c0_18], %33 {strides = array<i32>} : memref<8x128xf32, #tpu.memory_space<vmem>>, vector<8x128xf32>,
    return
  }
  func.func @transform_0(%arg0: i32, %arg1: i32, %arg2: i32) -> (i32, i32) {
    %c0_i32 = arith.constant 0 : i32
    return %arg0, %arg2 : i32, i32
  }
  func.func @transform_1(%arg0: i32, %arg1: i32, %arg2: i32) -> (i32, i32) {
    %c0_i32 = arith.constant 0 : i32
    %c0_i32_0 = arith.constant 0 : i32
    return %arg0, %c0_i32 : i32, i32
  }
  func.func @transform_2(%arg0: i32, %arg1: i32, %arg2: i32) -> (i32, i32) {
    %c0_i32 = arith.constant 0 : i32
    %c0_i32_0 = arith.constant 0 : i32
    return %arg0, %c0_i32 : i32, i32
  }
  func.func @transform_3(%arg0: i32, %arg1: i32, %arg2: i32) -> (i32, i32) {
    %c0_i32 = arith.constant 0 : i32
    return %arg2, %arg1 : i32, i32
  }
  func.func @transform_4(%arg0: i32, %arg1: i32, %arg2: i32) -> (i32, i32) {
    %c0_i32 = arith.constant 0 : i32
    %c0_i32_0 = arith.constant 0 : i32
    return %c0_i32, %arg1 : i32, i32
  }
  func.func @transform_5(%arg0: i32, %arg1: i32, %arg2: i32) -> (i32, i32) {
    %c0_i32 = arith.constant 0 : i32
    return %arg0, %arg1 : i32, i32
  }
}

</mosaic_0001>

<bundles_post_ra>
// kernel: tpu_custom_call.1
= control target key start
LH: loop header
LB: loop body
LE: loop exit
PB: predicated region body
PF: predicated region fallthrough
CT: control target
= control target key end

     0   :  { %10 = vsyncpa [#allocation3], 0  ;;  %s413_s0 = inlined_call_operand.vmem [shape: f32[8,128], index: 0, kind: input, shape index: {}]   ;;  %s414_s1 = inlined_call_operand.vmem [shape: f32[8,1], index: 1, kind: input, shape index: {}]   ;;  %s415_s2 = inlined_call_operand.vmem [shape: f32[8,1], index: 2, kind: input, shape index: {}]   ;;  %s416_s3 = inlined_call_operand.hbm [shape: f32[128,128], index: 3, kind: input, shape index: {}]   ;;  %s417_s4 = inlined_call_operand.vmem [shape: f32[8,128], index: 4, kind: input, shape index: {}]   ;;  %s418_s5 = inlined_call_operand.hbm [shape: f32[8,128], index: 5, kind: output, shape index: {}]  }
   0x1   :  { %11 = vsyncpa [#allocation4], 0  ;;  %s330_s18 = smov [#allocation2]   ;;  %s282_s22 = scalar_lea.hbm %s416_s3, 2048 }
   0x2   :  { %s23_s19 = sshll.u32 %s330_s18, 4  ;;  %p283_p0 = scmp.ne.s32.totalorder %s416_s3, %s282_s22  ;;  %s24_s19 = int_to_ptr.vmem [resolvable:$true] %s23_s19 }
   0x3   :  { %p286_p1 = scmp.lt.u32.totalorder %s282_s22, %s416_s3 }
   0x5   :  { %p288_p2 = pnand %p286_p1, %p283_p0 }
   0x7   :  { %291 = shalt.err (!%p288_p2)
}
   0x8   :  { %s292_s27 = scalar_lea.vmem %s24_s19, 2048  ;;  %p297_p4 = scmp.lt.s32.totalorder %s24_s19, %s24_s19 }
   0x9   :  { %p293_p3 = scmp.ne.s32.totalorder %s24_s19, %s292_s27  ;;  %p298_p5 = scmp.lt.s32.totalorder %s292_s27, %s292_s27 }
   0xb   :  { %p299_p6 = por %p298_p5, %p297_p4 }
   0xd   :  { %p300_p7 = pnand %p299_p6, %p293_p3 }
   0xf   :  { %303 = shalt.err (!%p300_p7)
}
  0x10   :  { %s331_s28 = smov 128   ;;  %s332_s29 = smov 8  }
  0x11   :  { %29 = dma.hbm_to_vmem [thread:$0]  %s416_s3, 2048, %s24_s19, [#allocation3], %s331_s28, %s331_s28, %s332_s29  }
  0x12   :  { %326 = dma.done.wait [#allocation3], 2048  }
  0x13   :  { %327 = vsyncadd [#allocation3], 4294965248  ;;  %v333_v0 = vmov 0.0|0.0   ;;  %vm334_vm0 = vmmov 0   ;;  %v335_v1 = vmov 0.0   ;;  %v336_v2 = vmov 0  }
  0x14   :  { %247 = vmatprep.subr.bf16.mxu0 %v333_v0  ;;  %244 = vmatprep.mubr.msk.f32.mxu0 %vm334_vm0, %v335_v1  ;;  %v36_v3 = vld [vmem:[#allocation2] sm:$0xff]  ;;  %v37_v4 = vld [vmem:[#allocation2 + $0x8] sm:$0xff]  ;;  %v38_v5 = vld [vmem:[#allocation2 + $0x10] sm:$0xff]  ;;  %s337_s17 = smov [#allocation5]  }
  0x15   :  { %279 = vset.pattern.permute.xlu0 %v336_v2  ;;  %v248_v6 = vpack.c.bf16 %v37_v4, %v36_v3  ;;  %v39_v7 = vld [vmem:[#allocation2 + $0x18] sm:$0xff]  ;;  %v40_v9 = vld [vmem:[#allocation2 + $0x20] sm:$0xff]  ;;  %v41_v10 = vld [vmem:[#allocation2 + $0x28] sm:$0xff]  ;;  %s181_s18 = sshll.u32 %s337_s17, 4  ;;  %s182_s18 = int_to_ptr.vmem [resolvable:$true] %s181_s18 }
  0x16   :  { %v251_v8 = vpack.c.bf16 %v39_v7, %v38_v5  ;;  %v126_v11 = vld [vmem:[%s414_s1] sm:$0xff]  ;;  %v254_v12 = vpack.c.bf16 %v41_v10, %v40_v9  ;;  %v42_v14 = vld [vmem:[#allocation2 + $0x30] sm:$0xff]  ;;  %v43_v15 = vld [vmem:[#allocation2 + $0x38] sm:$0xff]  ;;  %s304_s19 = scalar_lea.vmem %s182_s18, 128  ;;  %p309_p9 = scmp.lt.s32.totalorder %s182_s18, %s182_s18 }
  0x17   :  { %249 = vmatpush3.bf16.msra.mxu0 %v248_v6  ;;  %129 = vperm.xlu0 %279, %v126_v11   ;;  %v161_v13 = vld [vmem:[%s415_s2] sm:$0xff]  ;;  %v257_v16 = vpack.c.bf16 %v43_v15, %v42_v14  ;;  %v45_v18 = vld [vmem:[#allocation2 + $0x48] sm:$0xff]  ;;  %v46_v20 = vld [vmem:[#allocation2 + $0x50] sm:$0xff]  ;;  %p305_p8 = scmp.ne.s32.totalorder %s182_s18, %s304_s19  ;;  %p310_p10 = scmp.lt.s32.totalorder %s304_s19, %s304_s19 }
  0x18   :  { %250 = vmatprep.subr.bf16.mxu0 %v333_v0  ;;  %v44_v17 = vld [vmem:[#allocation2 + $0x40] sm:$0xff]  ;;  %v47_v21 = vld [vmem:[#allocation2 + $0x58] sm:$0xff]  ;;  %v49_v24 = vld [vmem:[#allocation2 + $0x68] sm:$0xff] }
  0x19   :  { %v260_v19 = vpack.c.bf16 %v45_v18, %v44_v17  ;;  %v263_v22 = vpack.c.bf16 %v47_v21, %v46_v20  ;;  %v48_v23 = vld [vmem:[#allocation2 + $0x60] sm:$0xff]  ;;  %v50_v26 = vld [vmem:[#allocation2 + $0x70] sm:$0xff]  ;;  %v51_v27 = vld [vmem:[#allocation2 + $0x78] sm:$0xff]  ;;  %p311_p11 = por %p310_p10, %p309_p9 }
  0x1a   :  { %v266_v25 = vpack.c.bf16 %v49_v24, %v48_v23  ;;  %v269_v28 = vpack.c.bf16 %v51_v27, %v50_v26  ;;  %v35_v29 = vld [vmem:[%s413_s0] sm:$0xff] }
  0x1b   :  { %252 = vmatpush3.bf16.msra.mxu0 %v251_v8  ;;  %168 = vperm.xlu0 %279, %v161_v13   ;;  %v190_v32 = vld [vmem:[%s417_s4] ss:$0 sm:$0xff]  ;;  %v192_v42 = vld [vmem:[%s417_s4 + $0x1] ss:$0 sm:$0xff]  ;;  %v193_v43 = vld [vmem:[%s417_s4 + $0x2] ss:$0 sm:$0xff]  ;;  %p312_p12 = pnand %p311_p11, %p305_p8 }
  0x1c   :  { %253 = vmatprep.subr.bf16.mxu0 %v333_v0  ;;  %v194_v48 = vld [vmem:[%s417_s4 + $0x3] ss:$0 sm:$0xff] }
  0x1f   :  { %255 = vmatpush3.bf16.msra.mxu0 %v254_v12 }
  0x20   :  { %256 = vmatprep.subr.bf16.mxu0 %v333_v0 }
  0x23   :  { %258 = vmatpush3.bf16.msra.mxu0 %v257_v16 }
  0x24   :  { %259 = vmatprep.subr.bf16.mxu0 %v333_v0 }
  0x27   :  { %261 = vmatpush3.bf16.msra.mxu0 %v260_v19 }
  0x28   :  { %262 = vmatprep.subr.bf16.mxu0 %v333_v0 }
  0x2b   :  { %264 = vmatpush3.bf16.msra.mxu0 %v263_v22 }
  0x2c   :  { %265 = vmatprep.subr.bf16.mxu0 %v333_v0 }
  0x2f   :  { %267 = vmatpush3.bf16.msra.mxu0 %v266_v25 }
  0x30   :  { %268 = vmatprep.subr.bf16.mxu0 %v333_v0 }
  0x33   :  { %270 = vmatpush3.bf16.msra.mxu0 %v269_v28 }
  0x36   :  { %245 = vmatmul.mubr.f32.vlgmr.msra.gmra.mrb[0].mxu0 %v35_v29 }
  0x96   :  { %v130_v30 = vpop.permute.xlu0 %129 }
  0x9a   :  { %v169_v47 = vpop.permute.xlu0 %168 }
  0x9b   :  { %vm171_vm3 = vcmp.eq.f32.partialorder %v194_v48, %v169_v47 }
 0x109   :  { %v118_v31 = vpop.f32.mrb[0].mxu0 }
 0x10a   :  { %v132_v33 = vmul.f32 %v130_v30, %v118_v31  ;;  %v246_v34 = vpop.f32.mrb[1].mxu0 }
 0x10c   :  { %v137_v35 = vmul.f32 %v190_v32, %v132_v33 }
 0x10e   :  { %v191_v36 = vclamps-f32 %v137_v35, 0.9999999 }
 0x110   :  { %v140_v37 = vmul.f32 %v191_v36, %v191_v36  ;;  %v154_v49 = vmul.f32 %v192_v42, %v191_v36 }
 0x112   :  { %v141_v38 = vsub.f32 1.0, %v140_v37 }
 0x114   :  { %v142_v39 = vmax.f32 %v141_v38, 0.0 }
 0x116   :  { %280 = vrsqrt.f32 %v142_v39  ;;  %vm145_vm1 = vcmp.eq.f32.partialorder %v142_v39, inf  ;;  %v148_v44 = vand.u32 2147483648, %v142_v39  ;;  %vm147_vm2 = vcmp.eq.f32.partialorder %v142_v39, 0.0 }
 0x120   :  { %v281_v40 = vpop.eup %280 }
 0x121   :  { %v144_v41 = vmul.f32 %v281_v40, %v142_v39 }
 0x123   :  { %v146_v45 = vsel %vm145_vm1, %v142_v39, %v144_v41 }
 0x124   :  { %v149_v46 = vsel %vm147_vm2, %v148_v44, %v146_v45 }
 0x125   :  { %v159_v50 = vmul.f32 %v193_v43, %v149_v46 }
 0x127   :  { %v160_v51 = vsub.f32 %v154_v49, %v159_v50 }
 0x129   :  { %v172_v52 = vsel %vm171_vm3, %v160_v51, %v137_v35 }
 0x12a   :  { %v173_v53 = vmul.f32 30.0, %v172_v52 }
 0x12c   :  { %174 = vst [vmem:[#allocation5] sm:$0xff] %v173_v53 }
 0x12d   :  { %315 = shalt.err (!%p312_p12)
}
 0x12e   :  { %s316_s4 = scalar_lea.hbm %s418_s5, 128 }
 0x12f   :  { %p317_p13 = scmp.ne.s32.totalorder %s418_s5, %s316_s4  ;;  %p320_p0 = scmp.lt.u32.totalorder %s316_s4, %s418_s5 }
 0x131   :  { %p322_p1 = pnand %p320_p0, %p317_p13 }
 0x133   :  { %325 = shalt.err (!%p322_p1)
}
 0x134   :  { %184 = dma.vmem_to_hbm [thread:$0]  %s182_s18, 128, %s418_s5, [#allocation4]  }
 0x135   :  { %328 = dma.done.wait [#allocation4], 128  }
 0x136   :  { %329 = vsyncadd [#allocation4], 4294967168 }
 0x137   :  { %188 = vsyncpa [#allocation3], 1 }
 0x138   :  { %189 = vsyncpa [#allocation4], 1 }

</bundles_post_ra>
